<compile_context>
chip_gen: v7x
topology: tpu7x:2x2x1
jax: 0.10.0
libtpu: 0.0.40
codegen_flags: <defaults>
</compile_context>

<pallas_src>
import math
import functools

import jax
import jax.numpy as jnp
from jax import lax
from jax.experimental import pallas as pl
from jax.experimental.pallas import tpu as pltpu


# ------------------------------- kernel ------------------------------------ #

def _flash_body(q_ref, k_ref, v_ref, mask_ref, o_ref, m_sc, l_sc, acc_sc, *,
                lane_dense):
    """One (head-block, q-block, k-block) step of online-softmax attention.

    q_ref: [h, qb, Dk] bf16 (pre-scaled by 1/sqrt(Dk))
    k_ref: [h, kb, Dk] bf16      v_ref: [h, kb, Dv] bf16
    mask_ref: [h or 1, qb, kb] int8 (1 == masked) or None
    o_ref: [h, qb, Dv] or lane-dense [qb, h*Dv]
    scratch: m_sc/l_sc [h, qb, 1] f32, acc_sc [h, qb, Dv] f32
    """
    ki = pl.program_id(2)

    @pl.when(ki == 0)
    def _init():
        m_sc[...] = jnp.full(m_sc.shape, -jnp.inf, dtype=m_sc.dtype)
        l_sc[...] = jnp.zeros(l_sc.shape, dtype=l_sc.dtype)
        acc_sc[...] = jnp.zeros(acc_sc.shape, dtype=acc_sc.dtype)

    # Heads-batched QK^T, contracting the last dims (no explicit k transpose);
    # bf16 operands, f32 MXU accumulation.
    s = lax.dot_general(
        q_ref[...], k_ref[...],
        dimension_numbers=(((2,), (2,)), ((0,), (0,))),
        preferred_element_type=jnp.float32,
    )                                                  # [h, qb, kb] f32

    if mask_ref is not None:
        # Additive bias (one VALU op) instead of compare+select.
        s = s + mask_ref[...].astype(jnp.float32) * jnp.float32(-1e9)

    m_prev = m_sc[...]
    m_new = jnp.maximum(m_prev, jnp.max(s, axis=-1, keepdims=True))
    alpha = jnp.exp(m_prev - m_new)                    # 0 on the first step
    p = jnp.exp(s - m_new)                             # [h, qb, kb] f32

    l_sc[...] = alpha * l_sc[...] + jnp.sum(p, axis=-1, keepdims=True)
    acc_sc[...] = alpha * acc_sc[...] + lax.dot_general(
        p.astype(v_ref.dtype), v_ref[...],
        dimension_numbers=(((2,), (1,)), ((0,), (0,))),
        preferred_element_type=jnp.float32,
    )
    m_sc[...] = m_new

    @pl.when(ki == pl.num_programs(2) - 1)
    def _finalize():
        inv = pl.reciprocal(l_sc[...], approx=True)    # EUP slot
        ctx = (acc_sc[...] * inv).astype(o_ref.dtype)  # [h, qb, Dv]
        if lane_dense:
            h, qb, dv = ctx.shape
            # Present a lane-dense [qb, h*Dv] slab (unmasked stores).
            o_ref[...] = jnp.transpose(ctx, (1, 0, 2)).reshape(qb, h * dv)
        else:
            o_ref[...] = ctx


def _flash_kernel_mask(q_ref, k_ref, v_ref, mask_ref, o_ref,
                       m_sc, l_sc, acc_sc, *, lane_dense):
    _flash_body(q_ref, k_ref, v_ref, mask_ref, o_ref, m_sc, l_sc, acc_sc,
                lane_dense=lane_dense)


def _flash_kernel_nomask(q_ref, k_ref, v_ref, o_ref,
                         m_sc, l_sc, acc_sc, *, lane_dense):
    _flash_body(q_ref, k_ref, v_ref, None, o_ref, m_sc, l_sc, acc_sc,
                lane_dense=lane_dense)


# ---------------------------- tiling helpers -------------------------------- #

def _vmem_plan():
    """(tile-plan budget, physical VMEM capacity) — generation aware."""
    cap = 64 << 20  # conservative default (v7x per-TC VMEM)
    try:
        info = pltpu.get_tpu_info()
        cap = int(getattr(info, "vmem_capacity_bytes", cap) or cap)
    except Exception:
        pass
    # Leave headroom for double-buffering slop / compiler scratch.
    return cap // 2, cap


def _pick_seq_block(S, target):
    """Full dim when small; otherwise the largest 128-multiple divisor <= target."""
    if S <= target:
        return S
    blk = (target // 128) * 128
    while blk >= 128:
        if S % blk == 0:
            return blk
        blk -= 128
    return S  # no legal split -> take the full dimension


def _per_head_bytes(q_blk, k_blk, Dk, Dv, out_itemsize):
    """Rough per-head VMEM footprint for one grid step (double-buffered I/O)."""
    bf16 = 2
    dma = 2 * bf16 * (q_blk * Dk + k_blk * (Dk + Dv))   # q/k/v tiles
    dma += 2 * 1 * q_blk * k_blk                        # int8 mask tile
    dma += 2 * out_itemsize * q_blk * Dv                # output tile
    scratch = 4 * q_blk * (2 + Dv)                      # m/l/acc
    live = 3 * 4 * q_blk * k_blk                        # f32 scores/p intermediates
    return int(1.3 * (dma + scratch + live))


def _pick_h_block(BH, per_head_bytes, budget):
    """Largest divisor of BH whose footprint fits the budget (no forced split:
    the serial grid on v5e/v6e gains nothing from smaller blocks, and v7x gets
    its parallelism from the head/Sq grid axes)."""
    best = 1
    for d in range(1, BH + 1):
        if BH % d == 0 and d * per_head_bytes <= budget:
            best = d
    return best


# ------------------------------ wrapper ------------------------------------ #

def scaled_dot_product_attention(q, k, v, mask=None, *,
                                 h_block=None, q_block=None, k_block=None):
    B, H, Sq, Dk = q.shape
    Sk = k.shape[2]
    Dv = v.shape[3]
    BH = B * H
    out_dtype = q.dtype
    scale = 1.0 / math.sqrt(Dk)

    # bf16 inputs (half the DMA bytes); fold 1/sqrt(Dk) into q during the cast
    # that is happening anyway — the scores tile never sees the multiply.
    qf = (q.reshape(BH, Sq, Dk) * scale).astype(jnp.bfloat16)
    kf = k.reshape(BH, Sk, Dk).astype(jnp.bfloat16)
    vf = v.reshape(BH, Sk, Dv).astype(jnp.bfloat16)

    if q_block is None:
        q_block = _pick_seq_block(Sq, 256)
    if k_block is None:
        k_block = _pick_seq_block(Sk, 512)
    assert Sq % q_block == 0 and Sk % k_block == 0

    budget, vmem_cap = _vmem_plan()
    if h_block is None:
        per_head = _per_head_bytes(q_block, k_block, Dk, Dv,
                                   jnp.dtype(out_dtype).itemsize)
        h_block = _pick_h_block(BH, per_head, budget)
    assert BH % h_block == 0

    # Lane-dense output slab when Dv alone would force masked partial stores.
    lane_dense = (Dv % 128 != 0) and ((h_block * Dv) % 128 == 0)

    grid = (BH // h_block, Sq // q_block, Sk // k_block)

    q_spec = pl.BlockSpec((h_block, q_block, Dk), lambda i, qi, ki: (i, qi, 0))
    k_spec = pl.BlockSpec((h_block, k_block, Dk), lambda i, qi, ki: (i, ki, 0))
    v_spec = pl.BlockSpec((h_block, k_block, Dv), lambda i, qi, ki: (i, ki, 0))

    if lane_dense:
        out_shape = jax.ShapeDtypeStruct((Sq, BH * Dv), out_dtype)
        out_spec = pl.BlockSpec((q_block, h_block * Dv), lambda i, qi, ki: (qi, i))
    else:
        out_shape = jax.ShapeDtypeStruct((BH, Sq, Dv), out_dtype)
        out_spec = pl.BlockSpec((h_block, q_block, Dv), lambda i, qi, ki: (i, qi, 0))

    scratch = [
        pltpu.VMEM((h_block, q_block, 1), jnp.float32),   # running max
        pltpu.VMEM((h_block, q_block, 1), jnp.float32),   # running sum
        pltpu.VMEM((h_block, q_block, Dv), jnp.float32),  # running context
    ]

    compiler_params = pltpu.CompilerParams(
        dimension_semantics=("parallel", "parallel", "arbitrary"),
        vmem_limit_bytes=max(int(vmem_cap * 0.9), 32 << 20),
    )

    if mask is not None:
        m = jnp.asarray(mask)
        while m.ndim < 4:
            m = m[None]
        if m.shape[1] == 1 and H % h_block == 0:
            # Head-invariant mask: keep one [Sq,Sk] int8 tile per batch and
            # broadcast over heads through the index_map (no HBM H-broadcast).
            mf = (jnp.broadcast_to(m, (B, 1, Sq, Sk)) != 0)
            mf = mf.astype(jnp.int8).reshape(B, Sq, Sk)
            heads_per_batch = H // h_block
            mask_spec = pl.BlockSpec(
                (1, q_block, k_block),
                lambda i, qi, ki: (i // heads_per_batch, qi, ki))
        else:
            mf = (jnp.broadcast_to(m, (B, H, Sq, Sk)) != 0)
            mf = mf.astype(jnp.int8).reshape(BH, Sq, Sk)
            mask_spec = pl.BlockSpec((h_block, q_block, k_block),
                                     lambda i, qi, ki: (i, qi, ki))
        kernel = functools.partial(_flash_kernel_mask, lane_dense=lane_dense)
        in_specs = [q_spec, k_spec, v_spec, mask_spec]
        args = (qf, kf, vf, mf)
    else:
        kernel = functools.partial(_flash_kernel_nomask, lane_dense=lane_dense)
        in_specs = [q_spec, k_spec, v_spec]
        args = (qf, kf, vf)

    out = pl.pallas_call(
        kernel,
        out_shape=out_shape,
        grid=grid,
        in_specs=in_specs,
        out_specs=out_spec,
        scratch_shapes=scratch,
        compiler_params=compiler_params,
    )(*args)

    if lane_dense:
        out = out.reshape(Sq, B, H, Dv)
        out = jnp.transpose(out, (1, 2, 0, 3))
    else:
        out = out.reshape(B, H, Sq, Dv)
    return out


# --------------------------- pure-JAX reference ----------------------------- #

def sdpa_reference(q, k, v, mask):
    d_k = q.shape[-1]
    scores = jnp.einsum("bhqd,bhkd->bhqk", q, k) / math.sqrt(d_k)
    if mask is not None:
        scores = jnp.where(mask != 0, -1e9, scores)
    attn = jax.nn.softmax(scores, axis=-1)
    return jnp.einsum("bhqk,bhkd->bhqd", attn, v)


# --------------------------------- main ------------------------------------- #

if __name__ == "__main__":
    # --- small config matching the module's toy shapes ---------------------- #
    B, H, Sq, Sk, Dk, Dv = 2, 4, 8, 8, 32, 32

    root = jax.random.PRNGKey(0)
    kq, kk, kv = jax.random.split(root, 3)
    q = jax.random.normal(kq, (B, H, Sq, Dk), jnp.float32)
    k = jax.random.normal(kk, (B, H, Sk, Dk), jnp.float32)
    v = jax.random.normal(kv, (B, H, Sk, Dv), jnp.float32)

    # Causal mask + key-padding on the last 2 positions of batch 1
    # (nonzero == masked, matching torch masked_fill_ semantics).
    causal = jnp.triu(jnp.ones((Sq, Sk), dtype=bool), k=1)
    pad = jnp.zeros((B, Sk), dtype=bool).at[1, -2:].set(True)
    mask = jnp.logical_or(causal[None, None, :, :], pad[:, None, None, :])
    mask = jnp.broadcast_to(mask, (B, H, Sq, Sk))

    out = jax.block_until_ready(scaled_dot_product_attention(q, k, v, mask))
    assert out.shape == (B, H, Sq, Dv)
    assert bool(jnp.all(jnp.isfinite(out)))
    ref = sdpa_reference(q, k, v, mask)
    err = float(jnp.max(jnp.abs(out - ref)))
    assert err < 1e-1, f"max abs err vs reference too large: {err}"

    # --- second config: exercises Sk-tiled flash accumulation and the
    #     head-invariant-mask BlockSpec broadcast path ------------------------ #
    B2, H2, Sq2, Sk2, Dk2, Dv2 = 1, 2, 128, 1024, 64, 128
    k2a, k2b, k2c = jax.random.split(jax.random.PRNGKey(1), 3)
    q2 = jax.random.normal(k2a, (B2, H2, Sq2, Dk2), jnp.float32)
    k2 = jax.random.normal(k2b, (B2, H2, Sk2, Dk2), jnp.float32)
    v2 = jax.random.normal(k2c, (B2, H2, Sk2, Dv2), jnp.float32)
    pad2 = jnp.zeros((B2, 1, 1, Sk2), dtype=bool).at[:, :, :, -100:].set(True)

    out2 = jax.block_until_ready(scaled_dot_product_attention(q2, k2, v2, pad2))
    ref2 = sdpa_reference(q2, k2, v2, pad2)
    err2 = float(jnp.max(jnp.abs(out2 - ref2)))
    assert err2 < 1e-1, f"max abs err (flash path) vs reference too large: {err2}"

    print("KERNEL_OK")
</pallas_src>

<mosaic_0001>
module attributes {stable_mosaic.version = 11 : i64} {
  func.func @_flash_kernel_mask(%arg0: i32, %arg1: i32, %arg2: i32, %arg3: memref<8x8x32xbf16, #tpu.memory_space<vmem>>, %arg4: memref<8x8x32xbf16, #tpu.memory_space<vmem>>, %arg5: memref<8x8x32xbf16, #tpu.memory_space<vmem>>, %arg6: memref<8x8x8xi8, #tpu.memory_space<vmem>>, %arg7: memref<8x256xf32, #tpu.memory_space<vmem>>, %arg8: memref<8x8x1xf32, #tpu.memory_space<vmem>>, %arg9: memref<8x8x1xf32, #tpu.memory_space<vmem>>, %arg10: memref<8x8x32xf32, #tpu.memory_space<vmem>>) attributes {dimension_semantics = [#tpu.dimension_semantics<parallel>, #tpu.dimension_semantics<parallel>, #tpu.dimension_semantics<arbitrary>], iteration_bounds = array<i64: 1, 1, 1>, scalar_prefetch = 0 : i64, scratch_operands = 3 : i64, tpu.core_type = #tpu.core_type<tc>, window_params = [{transform_indices = @transform_0, window_bounds = array<i64: 8, 8, 32>}, {transform_indices = @transform_1, window_bounds = array<i64: 8, 8, 32>}, {transform_indices = @transform_2, window_bounds = array<i64: 8, 8, 32>}, {transform_indices = @transform_3, window_bounds = array<i64: 8, 8, 8>}, {transform_indices = @transform_4, window_bounds = array<i64: 8, 256>}]} {
    %c0_i32 = arith.constant 0 : i32
    %0 = arith.cmpi eq, %arg2, %c0_i32 : i32
    %1 = arith.extui %0 : i1 to i32
    %c0_i32_0 = arith.constant 0 : i32
    %2 = arith.cmpi ne, %1, %c0_i32_0 : i32
    scf.if %2 {
      %cst_36 = arith.constant 0xFF800000 : f32
      %38 = vector.broadcast %cst_36 : f32 to vector<8x8x1xf32>
      %c0_37 = arith.constant 0 : index
      %c0_38 = arith.constant 0 : index
      %c0_39 = arith.constant 0 : index
      %39 = vector.load %arg8[%c0_37, %c0_38, %c0_39] : memref<8x8x1xf32, #tpu.memory_space<vmem>>, vector<8x8x1xf32>
      tpu.vector_store %arg8[%c0_37, %c0_38, %c0_39], %38 {strides = array<i32>} : memref<8x8x1xf32, #tpu.memory_space<vmem>>, vector<8x8x1xf32>,
      %cst_40 = arith.constant 0.000000e+00 : f32
      %40 = vector.broadcast %cst_40 : f32 to vector<8x8x1xf32>
      %c0_41 = arith.constant 0 : index
      %c0_42 = arith.constant 0 : index
      %c0_43 = arith.constant 0 : index
      %41 = vector.load %arg9[%c0_41, %c0_42, %c0_43] : memref<8x8x1xf32, #tpu.memory_space<vmem>>, vector<8x8x1xf32>
      tpu.vector_store %arg9[%c0_41, %c0_42, %c0_43], %40 {strides = array<i32>} : memref<8x8x1xf32, #tpu.memory_space<vmem>>, vector<8x8x1xf32>,
      %cst_44 = arith.constant 0.000000e+00 : f32
      %42 = vector.broadcast %cst_44 : f32 to vector<8x8x32xf32>
      %c0_45 = arith.constant 0 : index
      %c0_46 = arith.constant 0 : index
      %c0_47 = arith.constant 0 : index
      %43 = vector.load %arg10[%c0_45, %c0_46, %c0_47] : memref<8x8x32xf32, #tpu.memory_space<vmem>>, vector<8x8x32xf32>
      tpu.vector_store %arg10[%c0_45, %c0_46, %c0_47], %42 {strides = array<i32>} : memref<8x8x32xf32, #tpu.memory_space<vmem>>, vector<8x8x32xf32>,
    } else {
    }
    %c0 = arith.constant 0 : index
    %c0_1 = arith.constant 0 : index
    %c0_2 = arith.constant 0 : index
    %3 = vector.load %arg3[%c0, %c0_1, %c0_2] : memref<8x8x32xbf16, #tpu.memory_space<vmem>>, vector<8x8x32xbf16>
    %c0_3 = arith.constant 0 : index
    %c0_4 = arith.constant 0 : index
    %c0_5 = arith.constant 0 : index
    %4 = vector.load %arg4[%c0_3, %c0_4, %c0_5] : memref<8x8x32xbf16, #tpu.memory_space<vmem>>, vector<8x8x32xbf16>
    %cst = arith.constant dense<0.000000e+00> : vector<8x8x8xf32>
    %5 = tpu.matmul %3, %4, %cst {dimension_numbers = #tpu.dot_dimension_numbers<[2], [2], [1], [1], [0, 0, 0, 1, 1, 1], [0], [0]>} : vector<8x8x32xbf16>, vector<8x8x32xbf16>, vector<8x8x8xf32> -> vector<8x8x8xf32>
    %c0_6 = arith.constant 0 : index
    %c0_7 = arith.constant 0 : index
    %c0_8 = arith.constant 0 : index
    %6 = vector.load %arg6[%c0_6, %c0_7, %c0_8] : memref<8x8x8xi8, #tpu.memory_space<vmem>>, vector<8x8x8xi8>
    %7 = arith.sitofp %6 : vector<8x8x8xi8> to vector<8x8x8xf32>
    %cst_9 = arith.constant -1.000000e+09 : f32
    %8 = vector.broadcast %cst_9 : f32 to vector<8x8x8xf32>
    %9 = arith.mulf %7, %8 : vector<8x8x8xf32>
    %10 = arith.addf %5, %9 : vector<8x8x8xf32>
    %c0_10 = arith.constant 0 : index
    %c0_11 = arith.constant 0 : index
    %c0_12 = arith.constant 0 : index
    %11 = vector.load %arg8[%c0_10, %c0_11, %c0_12] : memref<8x8x1xf32, #tpu.memory_space<vmem>>, vector<8x8x1xf32>
    %cst_13 = arith.constant dense<0xFF800000> : vector<8x8xf32>
    %12 = vector.multi_reduction <maximumf>, %10, %cst_13 [2] : vector<8x8x8xf32> to vector<8x8xf32>
    %13 = vector.shape_cast %12 : vector<8x8xf32> to vector<8x8x1xf32>
    %14 = arith.maximumf %11, %13 : vector<8x8x1xf32>
    %15 = arith.subf %11, %14 : vector<8x8x1xf32>
    %16 = math.exp %15 : vector<8x8x1xf32>
    %17 = vector.broadcast %14 : vector<8x8x1xf32> to vector<8x8x8xf32>
    %18 = arith.subf %10, %17 : vector<8x8x8xf32>
    %19 = math.exp %18 : vector<8x8x8xf32>
    %c0_14 = arith.constant 0 : index
    %c0_15 = arith.constant 0 : index
    %c0_16 = arith.constant 0 : index
    %20 = vector.load %arg9[%c0_14, %c0_15, %c0_16] : memref<8x8x1xf32, #tpu.memory_space<vmem>>, vector<8x8x1xf32>
    %21 = arith.mulf %16, %20 : vector<8x8x1xf32>
    %cst_17 = arith.constant dense<0.000000e+00> : vector<8x8xf32>
    %22 = vector.multi_reduction <add>, %19, %cst_17 [2] : vector<8x8x8xf32> to vector<8x8xf32>
    %23 = vector.shape_cast %22 : vector<8x8xf32> to vector<8x8x1xf32>
    %24 = arith.addf %21, %23 : vector<8x8x1xf32>
    %c0_18 = arith.constant 0 : index
    %c0_19 = arith.constant 0 : index
    %c0_20 = arith.constant 0 : index
    %25 = vector.load %arg9[%c0_18, %c0_19, %c0_20] : memref<8x8x1xf32, #tpu.memory_space<vmem>>, vector<8x8x1xf32>
    tpu.vector_store %arg9[%c0_18, %c0_19, %c0_20], %24 {strides = array<i32>} : memref<8x8x1xf32, #tpu.memory_space<vmem>>, vector<8x8x1xf32>,
    %c0_21 = arith.constant 0 : index
    %c0_22 = arith.constant 0 : index
    %c0_23 = arith.constant 0 : index
    %26 = vector.load %arg10[%c0_21, %c0_22, %c0_23] : memref<8x8x32xf32, #tpu.memory_space<vmem>>, vector<8x8x32xf32>
    %27 = vector.broadcast %16 : vector<8x8x1xf32> to vector<8x8x32xf32>
    %28 = arith.mulf %27, %26 : vector<8x8x32xf32>
    %29 = arith.truncf %19 : vector<8x8x8xf32> to vector<8x8x8xbf16>
    %c0_24 = arith.constant 0 : index
    %c0_25 = arith.constant 0 : index
    %c0_26 = arith.constant 0 : index
    %30 = vector.load %arg5[%c0_24, %c0_25, %c0_26] : memref<8x8x32xbf16, #tpu.memory_space<vmem>>, vector<8x8x32xbf16>
    %cst_27 = arith.constant dense<0.000000e+00> : vector<8x8x32xf32>
    %31 = tpu.matmul %29, %30, %cst_27 {dimension_numbers = #tpu.dot_dimension_numbers<[2], [1], [1], [2], [0, 0, 0, 1, 1, 2], [0], [0]>} : vector<8x8x8xbf16>, vector<8x8x32xbf16>, vector<8x8x32xf32> -> vector<8x8x32xf32>
    %32 = arith.addf %28, %31 : vector<8x8x32xf32>
    %c0_28 = arith.constant 0 : index
    %c0_29 = arith.constant 0 : index
    %c0_30 = arith.constant 0 : index
    %33 = vector.load %arg10[%c0_28, %c0_29, %c0_30] : memref<8x8x32xf32, #tpu.memory_space<vmem>>, vector<8x8x32xf32>
    tpu.vector_store %arg10[%c0_28, %c0_29, %c0_30], %32 {strides = array<i32>} : memref<8x8x32xf32, #tpu.memory_space<vmem>>, vector<8x8x32xf32>,
    %c0_31 = arith.constant 0 : index
    %c0_32 = arith.constant 0 : index
    %c0_33 = arith.constant 0 : index
    %34 = vector.load %arg8[%c0_31, %c0_32, %c0_33] : memref<8x8x1xf32, #tpu.memory_space<vmem>>, vector<8x8x1xf32>
    tpu.vector_store %arg8[%c0_31, %c0_32, %c0_33], %14 {strides = array<i32>} : memref<8x8x1xf32, #tpu.memory_space<vmem>>, vector<8x8x1xf32>,
    %c0_i32_34 = arith.constant 0 : i32
    %35 = arith.cmpi eq, %arg2, %c0_i32_34 : i32
    %36 = arith.extui %35 : i1 to i32
    %c0_i32_35 = arith.constant 0 : i32
    %37 = arith.cmpi ne, %36, %c0_i32_35 : i32
    scf.if %37 {
      %c0_36 = arith.constant 0 : index
      %c0_37 = arith.constant 0 : index
      %c0_38 = arith.constant 0 : index
      %38 = vector.load %arg9[%c0_36, %c0_37, %c0_38] : memref<8x8x1xf32, #tpu.memory_space<vmem>>, vector<8x8x1xf32>
      %39 = tpu.reciprocal %38 {approx = true} : vector<8x8x1xf32> -> vector<8x8x1xf32>
      %c0_39 = arith.constant 0 : index
      %c0_40 = arith.constant 0 : index
      %c0_41 = arith.constant 0 : index
      %40 = vector.load %arg10[%c0_39, %c0_40, %c0_41] : memref<8x8x32xf32, #tpu.memory_space<vmem>>, vector<8x8x32xf32>
      %41 = vector.broadcast %39 : vector<8x8x1xf32> to vector<8x8x32xf32>
      %42 = arith.mulf %40, %41 : vector<8x8x32xf32>
      %43 = tpu.transpose %42, [1, 0, 2] : vector<8x8x32xf32> -> vector<8x8x32xf32>
      %44 = vector.shape_cast %43 : vector<8x8x32xf32> to vector<8x256xf32>
      %c0_42 = arith.constant 0 : index
      %c0_43 = arith.constant 0 : index
      %45 = vector.load %arg7[%c0_42, %c0_43] : memref<8x256xf32, #tpu.memory_space<vmem>>, vector<8x256xf32>
      tpu.vector_store %arg7[%c0_42, %c0_43], %44 {strides = array<i32>} : memref<8x256xf32, #tpu.memory_space<vmem>>, vector<8x256xf32>,
    } else {
    }
    return
  }
  func.func @transform_0(%arg0: i32, %arg1: i32, %arg2: i32) -> (i32, i32, i32) {
    %c0_i32 = arith.constant 0 : i32
    %c0_i32_0 = arith.constant 0 : i32
    return %arg0, %arg1, %c0_i32 : i32, i32, i32
  }
  func.func @transform_1(%arg0: i32, %arg1: i32, %arg2: i32) -> (i32, i32, i32) {
    %c0_i32 = arith.constant 0 : i32
    %c0_i32_0 = arith.constant 0 : i32
    return %arg0, %arg2, %c0_i32 : i32, i32, i32
  }
  func.func @transform_2(%arg0: i32, %arg1: i32, %arg2: i32) -> (i32, i32, i32) {
    %c0_i32 = arith.constant 0 : i32
    %c0_i32_0 = arith.constant 0 : i32
    return %arg0, %arg2, %c0_i32 : i32, i32, i32
  }
  func.func @transform_3(%arg0: i32, %arg1: i32, %arg2: i32) -> (i32, i32, i32) {
    %c0_i32 = arith.constant 0 : i32
    return %arg0, %arg1, %arg2 : i32, i32, i32
  }
  func.func @transform_4(%arg0: i32, %arg1: i32, %arg2: i32) -> (i32, i32) {
    %c0_i32 = arith.constant 0 : i32
    return %arg1, %arg0 : i32, i32
  }
}

</mosaic_0001>

<bundles_post_ra>
// kernel: tpu_custom_call.1
= control target key start
LH: loop header
LB: loop body
LE: loop exit
PB: predicated region body
PF: predicated region fallthrough
CT: control target
= control target key end

     0   :  { %9 = vsyncpa [#allocation6], 0  ;;  %s2381_s0 = inlined_call_operand.hbm [shape: bf16[8,8,32], index: 0, kind: input, shape index: {}]   ;;  %s2382_s1 = inlined_call_operand.hbm [shape: bf16[8,8,32], index: 1, kind: input, shape index: {}]   ;;  %s2383_s2 = inlined_call_operand.hbm [shape: bf16[8,8,32], index: 2, kind: input, shape index: {}]   ;;  %s2384_s3 = inlined_call_operand.hbm [shape: s8[8,8,8], index: 3, kind: input, shape index: {}]   ;;  %s2385_s4 = inlined_call_operand.hbm [shape: f32[8,256], index: 4, kind: output, shape index: {}]  }
   0x1   :  { %10 = vsyncpa [#allocation9], 0 }
   0x2   :  { %11 = vsyncpa [#allocation12], 0 }
   0x3   :  { %12 = vsyncpa [#allocation7], 0  ;;  %s1925_s15 = smov [#allocation8]   ;;  %s1926_s17 = smov [#allocation5]  }
   0x4   :  { %s30_s16 = sshll.u32 %s1925_s15, 4  ;;  %s18_s18 = sshll.u32 %s1926_s17, 4  ;;  %s31_s16 = int_to_ptr.vmem [resolvable:$true] %s30_s16  ;;  %s1966_s18 = int_to_ptr.vmem [resolvable:$true] %s18_s18 }
   0x5   :  { %s1807_s21 = scalar_lea.hbm %s2382_s1, 512 }
   0x6   :  { %p1808_p0 = scmp.ne.s32.totalorder %s2382_s1, %s1807_s21  ;;  %p1811_p1 = scmp.lt.u32.totalorder %s1807_s21, %s2382_s1 }
   0x8   :  { %p1813_p2 = pnand %p1811_p1, %p1808_p0 }
   0xa   :  { %1816 = shalt.err (!%p1813_p2)
}
   0xb   :  { %s1817_s26 = scalar_lea.vmem %s31_s16, 512  ;;  %p1822_p4 = scmp.lt.s32.totalorder %s31_s16, %s31_s16 }
   0xc   :  { %p1818_p3 = scmp.ne.s32.totalorder %s31_s16, %s1817_s26  ;;  %p1823_p5 = scmp.lt.s32.totalorder %s1817_s26, %s1817_s26 }
   0xe   :  { %p1824_p6 = por %p1823_p5, %p1822_p4 }
  0x10   :  { %p1825_p7 = pnand %p1824_p6, %p1818_p3 }
  0x12   :  { %1828 = shalt.err (!%p1825_p7)
}
  0x13   :  { %s1927_s27 = smov 64   ;;  %s1928_s28 = smov 4  }
  0x14   :  { %36 = dma.hbm_to_vmem [thread:$0]  %s2382_s1, 512, %s31_s16, [#allocation9], %s1927_s27, %s1927_s27, %s1928_s28  }
  0x15   :  { %s1829_s7 = scalar_lea.hbm %s2381_s0, 512 }
  0x16   :  { %p1830_p8 = scmp.ne.s32.totalorder %s2381_s0, %s1829_s7  ;;  %p1833_p9 = scmp.lt.u32.totalorder %s1829_s7, %s2381_s0 }
  0x18   :  { %p1835_p10 = pnand %p1833_p9, %p1830_p8 }
  0x1a   :  { %1838 = shalt.err (!%p1835_p10)
}
  0x1b   :  { %s1839_s12 = scalar_lea.vmem %s1966_s18, 512  ;;  %p1844_p12 = scmp.lt.s32.totalorder %s1966_s18, %s1966_s18 }
  0x1c   :  { %p1840_p11 = scmp.ne.s32.totalorder %s1966_s18, %s1839_s12  ;;  %p1845_p13 = scmp.lt.s32.totalorder %s1839_s12, %s1839_s12 }
  0x1e   :  { %p1846_p0 = por %p1845_p13, %p1844_p12 }
  0x20   :  { %p1847_p1 = pnand %p1846_p0, %p1840_p11 }
  0x22   :  { %1850 = shalt.err (!%p1847_p1)
}
  0x23   :  { %24 = dma.hbm_to_vmem [thread:$0]  %s2381_s0, 512, %s1966_s18, [#allocation6], %s1927_s27, %s1927_s27, %s1928_s28  }
  0x24   :  { %s1929_s14 = smov [#allocation10]   ;;  %s1930_s16 = smov [#allocation11]  }
  0x25   :  { %s42_s15 = sshll.u32 %s1929_s14, 4  ;;  %s54_s17 = sshll.u32 %s1930_s16, 4  ;;  %s43_s15 = int_to_ptr.vmem [resolvable:$true] %s42_s15  ;;  %s2003_s17 = int_to_ptr.vmem [resolvable:$true] %s54_s17 }
  0x26   :  { %s1851_s21 = scalar_lea.hbm %s2383_s2, 512 }
  0x27   :  { %p1852_p2 = scmp.ne.s32.totalorder %s2383_s2, %s1851_s21  ;;  %p1855_p3 = scmp.lt.u32.totalorder %s1851_s21, %s2383_s2 }
  0x29   :  { %p1857_p4 = pnand %p1855_p3, %p1852_p2 }
  0x2b   :  { %1860 = shalt.err (!%p1857_p4)
}
  0x2c   :  { %s1861_s0 = scalar_lea.vmem %s43_s15, 512  ;;  %p1866_p6 = scmp.lt.s32.totalorder %s43_s15, %s43_s15 }
  0x2d   :  { %p1862_p5 = scmp.ne.s32.totalorder %s43_s15, %s1861_s0  ;;  %p1867_p7 = scmp.lt.s32.totalorder %s1861_s0, %s1861_s0 }
  0x2f   :  { %p1868_p8 = por %p1867_p7, %p1866_p6 }
  0x31   :  { %p1869_p9 = pnand %p1868_p8, %p1862_p5 }
  0x33   :  { %1872 = shalt.err (!%p1869_p9)
}
  0x34   :  { %48 = dma.hbm_to_vmem [thread:$0]  %s2383_s2, 512, %s43_s15, [#allocation9], %s1927_s27, %s1927_s27, %s1928_s28  }
  0x35   :  { %s1873_s5 = scalar_lea.hbm %s2384_s3, 256 }
  0x36   :  { %p1874_p10 = scmp.ne.s32.totalorder %s2384_s3, %s1873_s5  ;;  %p1877_p11 = scmp.lt.u32.totalorder %s1873_s5, %s2384_s3 }
  0x38   :  { %p1879_p12 = pnand %p1877_p11, %p1874_p10 }
  0x3a   :  { %1882 = shalt.err (!%p1879_p12)
}
  0x3b   :  { %s1883_s10 = scalar_lea.vmem %s2003_s17, 256  ;;  %p1888_p0 = scmp.lt.s32.totalorder %s2003_s17, %s2003_s17 }
  0x3c   :  { %p1884_p13 = scmp.ne.s32.totalorder %s2003_s17, %s1883_s10  ;;  %p1889_p1 = scmp.lt.s32.totalorder %s1883_s10, %s1883_s10 }
  0x3e   :  { %p1890_p2 = por %p1889_p1, %p1888_p0 }
  0x40   :  { %p1891_p3 = pnand %p1890_p2, %p1884_p13 }
  0x42   :  { %1894 = shalt.err (!%p1891_p3)
}
  0x43   :  { %s1931_s2 = smov 32   ;;  %s1932_s28 = smov 2  }
  0x44   :  { %60 = dma.hbm_to_vmem [thread:$0]  %s2384_s3, 256, %s2003_s17, [#allocation12], %s1931_s2, %s1931_s2, %s1932_s28  }
  0x45   :  { %1917 = dma.done.wait [#allocation6], 512  }
  0x46   :  { %1918 = vsyncadd [#allocation6], 4294966784 }
  0x47   :  { %1919 = dma.done.wait [#allocation9], 1024  }
  0x48   :  { %1920 = vsyncadd [#allocation9], 4294966272 }
  0x49   :  { %1921 = dma.done.wait [#allocation12], 256  }
  0x4a   :  { %1922 = vsyncadd [#allocation12], 4294967040  ;;  %vm95_vm0 = vcmask 261120   ;;  %v1933_v0 = vmov 0.0   ;;  %vm1934_vm1 = vmmov 0   ;;  %vm78_vm2 = vcmask 7168  }
  0x4b   :  { %1642 = vmatprep.subr.bf16.mxu0 %v1933_v0  ;;  %96 = vst.msk [vmem:[#allocation4] sm:$0xff] %vm95_vm0, %v1933_v0  ;;  %97 = vst.msk [vmem:[#allocation4 + $0x8] sm:$0xff] %vm95_vm0, %v1933_v0  ;;  %1648 = vmatprep.subr.bf16.mxu1 %v1933_v0  ;;  %v112_v1 = vld [vmem:[#allocation8] sm:$0xf]  ;;  %v113_v2 = vld [vmem:[#allocation8 + $0x4] sm:$0xf] }
  0x4c   :  { %98 = vst.msk [vmem:[#allocation4 + $0x10] sm:$0xff] %vm95_vm0, %v1933_v0  ;;  %99 = vst.msk [vmem:[#allocation4 + $0x18] sm:$0xff] %vm95_vm0, %v1933_v0  ;;  %1644 = vmatprep.mubr.msk.bf16.mxu0 %vm1934_vm1, %v1933_v0  ;;  %1650 = vmatprep.mubr.msk.bf16.mxu1 %vm1934_vm1, %v1933_v0  ;;  %v157_v3 = vsel %vm95_vm0, %v112_v1, 0  ;;  %v203_v4 = vsel %vm95_vm0, %v113_v2, 0  ;;  %v114_v5 = vld [vmem:[#allocation8 + $0x8] sm:$0xf] }
  0x4d   :  { %100 = vst.msk [vmem:[#allocation4 + $0x20] sm:$0xff] %vm95_vm0, %v1933_v0  ;;  %101 = vst.msk [vmem:[#allocation4 + $0x28] sm:$0xff] %vm95_vm0, %v1933_v0  ;;  %1643 = vmatpush3.bf16.xpose.msra.mxu0 %v157_v3  ;;  %1649 = vmatpush3.bf16.xpose.msra.mxu1 %v203_v4  ;;  %v115_v6 = vld [vmem:[#allocation8 + $0xc] sm:$0xf]  ;;  %v104_v7 = vld [vmem:[#allocation5] sm:$0xf] }
  0x4e   :  { %102 = vst.msk [vmem:[#allocation4 + $0x30] sm:$0xff] %vm95_vm0, %v1933_v0  ;;  %103 = vst.msk [vmem:[#allocation4 + $0x38] sm:$0xff] %vm95_vm0, %v1933_v0  ;;  %1654 = vmatprep.subr.bf16.mxu0 %v1933_v0  ;;  %1660 = vmatprep.subr.bf16.mxu1 %v1933_v0  ;;  %v105_v8 = vld [vmem:[#allocation5 + $0x4] sm:$0xf]  ;;  %v249_v9 = vsel %vm95_vm0, %v114_v5, 0  ;;  %v295_v10 = vsel %vm95_vm0, %v115_v6, 0 }
  0x4f   :  { %v116_v11 = vld [vmem:[#allocation8 + $0x10] sm:$0xf]  ;;  %v117_v12 = vld [vmem:[#allocation8 + $0x14] sm:$0xf]  ;;  %v106_v13 = vld [vmem:[#allocation5 + $0x8] sm:$0xf] }
  0x50   :  { %v107_v14 = vld [vmem:[#allocation5 + $0xc] sm:$0xf]  ;;  %v341_v15 = vsel %vm95_vm0, %v116_v11, 0  ;;  %v387_v16 = vsel %vm95_vm0, %v117_v12, 0  ;;  %v118_v17 = vld [vmem:[#allocation8 + $0x18] sm:$0xf] }
  0x51   :  { %v119_v18 = vld [vmem:[#allocation8 + $0x1c] sm:$0xf]  ;;  %v108_v19 = vld [vmem:[#allocation5 + $0x10] sm:$0xf]  ;;  %v109_v20 = vld [vmem:[#allocation5 + $0x14] sm:$0xf] }
  0x52   :  { %v433_v21 = vsel %vm95_vm0, %v118_v17, 0  ;;  %v479_v22 = vsel %vm95_vm0, %v119_v18, 0  ;;  %v110_v23 = vld [vmem:[#allocation5 + $0x18] sm:$0xf]  ;;  %v111_v24 = vld [vmem:[#allocation5 + $0x1c] sm:$0xf] }
  0x53   :  { %v1935_v25 = vmov -inf   ;;  %87 = vst.msk [vmem:[#allocation3] sm:$0xff] %vm78_vm2, %v1933_v0  ;;  %88 = vst.msk [vmem:[#allocation3 + $0x8] sm:$0xff] %vm78_vm2, %v1933_v0  ;;  %v1595_v26 = vld [vmem:[#allocation11] sm:$0xff]   ;;  %vm529_vm3 = vcmask 64512   ;;  %v1739_v43 = vld [vmem:[#allocation11 + $0x8] sm:$0xff]  }
  0x54   :  { %1645 = vmatmul.mubr.msk.bf16.vlgmr.msra.gmra.mrb[0].mxu0 %vm95_vm0, %v104_v7  ;;  %1651 = vmatmul.mubr.msk.bf16.vlgmr.msra.gmra.mrb[0].mxu1 %vm95_vm0, %v105_v8  ;;  %79 = vst.msk [vmem:[#allocation2] sm:$0xff] %vm78_vm2, %v1935_v25  ;;  %80 = vst.msk [vmem:[#allocation2 + $0x8] sm:$0xff] %vm78_vm2, %v1935_v25  ;;  %v1596_v27 = vunpack.c.0.s8 %v1595_v26  ;;  %v1597_v28 = vunpack.c.1.s8 %v1595_v26  ;;  %v1600_v33 = vunpack.c.2.s8 %v1595_v26  ;;  %v1601_v34 = vunpack.c.3.s8 %v1595_v26  ;;  %s1939_s3 = smov 96   ;;  %s1940_s1 = smov [#allocation13]  }
  0x55   :  { %1655 = vmatpush3.bf16.xpose.msra.mxu0 %v249_v9  ;;  %1661 = vmatpush3.bf16.xpose.msra.mxu1 %v295_v10  ;;  %81 = vst.msk [vmem:[#allocation2 + $0x10] sm:$0xff] %vm78_vm2, %v1935_v25  ;;  %82 = vst.msk [vmem:[#allocation2 + $0x18] sm:$0xff] %vm78_vm2, %v1935_v25  ;;  %v1604_v49 = vunpack.c.0.s8 %v1739_v43  ;;  %v1605_v53 = vunpack.c.1.s8 %v1739_v43  ;;  %v1608_v7 = vunpack.c.2.s8 %v1739_v43  ;;  %v1609_v8 = vunpack.c.3.s8 %v1739_v43  ;;  %s1559_s13 = sshll.u32 %s1940_s1, 4  ;;  %s1560_s13 = int_to_ptr.vmem [resolvable:$true] %s1559_s13 }
  0x56   :  { %1656 = vmatprep.mubr.msk.bf16.mxu0 %vm1934_vm1, %v1933_v0  ;;  %1666 = vmatprep.subr.bf16.mxu0 %v1933_v0  ;;  %83 = vst.msk [vmem:[#allocation2 + $0x20] sm:$0xff] %vm78_vm2, %v1935_v25  ;;  %84 = vst.msk [vmem:[#allocation2 + $0x28] sm:$0xff] %vm78_vm2, %v1935_v25  ;;  %v136_v29 = vcvt.s32.f32 %v1596_v27  ;;  %v137_v30 = vcvt.s32.f32 %v1597_v28  ;;  %v138_v41 = vcvt.s32.f32 %v1600_v33  ;;  %v139_v42 = vcvt.s32.f32 %v1601_v34  ;;  %p1900_p5 = scmp.lt.s32.totalorder %s1560_s13, %s1560_s13 }
  0x57   :  { %1662 = vmatprep.mubr.msk.bf16.mxu1 %vm1934_vm1, %v1933_v0  ;;  %1672 = vmatprep.subr.bf16.mxu1 %v1933_v0  ;;  %85 = vst.msk [vmem:[#allocation2 + $0x30] sm:$0xff] %vm78_vm2, %v1935_v25  ;;  %86 = vst.msk [vmem:[#allocation2 + $0x38] sm:$0xff] %vm78_vm2, %v1935_v25  ;;  %v140_v56 = vcvt.s32.f32 %v1604_v49  ;;  %v141_v61 = vcvt.s32.f32 %v1605_v53  ;;  %vm782_vm4 = vcmask 1043456   ;;  %vm1544_vm5 = vcmask 523264  }
  0x58   :  { %89 = vst.msk [vmem:[#allocation3 + $0x10] sm:$0xff] %vm78_vm2, %v1933_v0  ;;  %90 = vst.msk [vmem:[#allocation3 + $0x18] sm:$0xff] %vm78_vm2, %v1933_v0  ;;  %v144_v31 = vmul.f32 -1e+09, %v136_v29  ;;  %v145_v32 = vmul.f32 -1e+09, %v137_v30 }
  0x59   :  { %91 = vst.msk [vmem:[#allocation3 + $0x20] sm:$0xff] %vm78_vm2, %v1933_v0  ;;  %92 = vst.msk [vmem:[#allocation3 + $0x28] sm:$0xff] %vm78_vm2, %v1933_v0  ;;  %v146_v51 = vmul.f32 -1e+09, %v138_v41  ;;  %v147_v52 = vmul.f32 -1e+09, %v139_v42 }
  0x5a   :  { %93 = vst.msk [vmem:[#allocation3 + $0x30] sm:$0xff] %vm78_vm2, %v1933_v0  ;;  %94 = vst.msk [vmem:[#allocation3 + $0x38] sm:$0xff] %vm78_vm2, %v1933_v0  ;;  %v148_v4 = vmul.f32 -1e+09, %v140_v56  ;;  %v149_v6 = vmul.f32 -1e+09, %v141_v61 }
  0x5b   :  { %v2162_v43 = vld [vmem:[#allocation2 + $0x8] sm:$0xff]  ;;  %vm1546_vm6 = vcmask 785408  }
  0x5c   :  { %1657 = vmatmul.mubr.msk.bf16.vlgmr.msra.gmra.mrb[4].mxu0 %vm95_vm0, %v106_v13  ;;  %1663 = vmatmul.mubr.msk.bf16.vlgmr.msra.gmra.mrb[4].mxu1 %vm95_vm0, %v107_v14 }
  0x5d   :  { %1667 = vmatpush3.bf16.xpose.msra.mxu0 %v341_v15  ;;  %1673 = vmatpush3.bf16.xpose.msra.mxu1 %v387_v16  ;;  %v142_v15 = vcvt.s32.f32 %v1608_v7  ;;  %v143_v16 = vcvt.s32.f32 %v1609_v8  ;;  %v2194_v56 = vld [vmem:[#allocation2 + $0x28] sm:$0xff] }
  0x5e   :  { %1668 = vmatprep.mubr.msk.bf16.mxu0 %vm1934_vm1, %v1933_v0  ;;  %1678 = vmatprep.subr.bf16.mxu0 %v1933_v0  ;;  %v2219_v7 = vld [vmem:[#allocation2 + $0x30] sm:$0xff]  ;;  %v2221_v8 = vld [vmem:[#allocation2 + $0x38] sm:$0xff] }
  0x5f   :  { %1674 = vmatprep.mubr.msk.bf16.mxu1 %vm1934_vm1, %v1933_v0  ;;  %1684 = vmatprep.subr.bf16.mxu1 %v1933_v0  ;;  %v151_v25 = vmul.f32 -1e+09, %v143_v16 }
  0x64   :  { %1669 = vmatmul.mubr.msk.bf16.vlgmr.msra.gmra.mrb[8].mxu0 %vm95_vm0, %v108_v19  ;;  %1675 = vmatmul.mubr.msk.bf16.vlgmr.msra.gmra.mrb[8].mxu1 %vm95_vm0, %v109_v20 }
  0x65   :  { %1679 = vmatpush3.bf16.xpose.msra.mxu0 %v433_v21  ;;  %1685 = vmatpush3.bf16.xpose.msra.mxu1 %v479_v22 }
  0x66   :  { %1680 = vmatprep.mubr.msk.bf16.mxu0 %vm1934_vm1, %v1933_v0  ;;  %1686 = vmatprep.mubr.msk.bf16.mxu1 %vm1934_vm1, %v1933_v0 }
  0x67   :  { %1690 = vmatprep.subr.bf16.mxu0 %v1933_v0  ;;  %1696 = vmatprep.subr.bf16.mxu1 %v1933_v0 }
  0x6c   :  { %1681 = vmatmul.mubr.msk.bf16.vlgmr.msra.gmra.mrb[12].mxu0 %vm95_vm0, %v110_v23  ;;  %1687 = vmatmul.mubr.msk.bf16.vlgmr.msra.gmra.mrb[12].mxu1 %vm95_vm0, %v111_v24  ;;  %v1936_v23 = vmov 0   ;;  %v150_v24 = vmul.f32 -1e+09, %v142_v15 }
  0x6d   :  { %1692 = vmatprep.mubr.msk.bf16.mxu0 %vm1934_vm1, %v1933_v0  ;;  %1698 = vmatprep.mubr.msk.bf16.mxu1 %vm1934_vm1, %v1933_v0 }
  0x6e   :  { %1757 = vset.pattern.permute.xlu0 %v1936_v23  ;;  %1758 = vset.pattern.permute.xlu1 %v1936_v23 }
 0x127   :  { %v193_v35 = vpop.f32.mrb[0].mxu0  ;;  %v239_v36 = vpop.f32.mrb[0].mxu1 }
 0x128   :  { %v2125_v37 = vadd.f32 %v193_v35, %v144_v31  ;;  %v1646_v38 = vpop.f32.mrb[1].mxu0  ;;  %v2127_v39 = vadd.f32 %v239_v36, %v145_v32  ;;  %v1652_v40 = vpop.f32.mrb[1].mxu1 }
 0x129   :  { %v196_v44 = vpop.f32.mrb[2].mxu0  ;;  %v242_v45 = vpop.f32.mrb[2].mxu1  ;;  %v2157_v40 = vld [vmem:[#allocation2] sm:$0xff] }
 0x12a   :  { %v1647_v46 = vpop.f32.mrb[3].mxu0  ;;  %v530_v47 = vsel %vm529_vm3, %v2125_v37, -inf  ;;  %v1653_v48 = vpop.f32.mrb[3].mxu1  ;;  %v533_v50 = vsel %vm529_vm3, %v2127_v39, -inf }
 0x12b   :  { %531 = vmax.xlane.f32.xlu0 %v530_v47  ;;  %v2172_v47 = vld [vmem:[#allocation2 + $0x10] sm:$0xff] }
 0x12f   :  { %534 = vmax.xlane.f32.xlu0 %v533_v50  ;;  %v285_v54 = vpop.f32.mrb[4].mxu0  ;;  %v331_v55 = vpop.f32.mrb[4].mxu1 }
 0x130   :  { %v2133_v57 = vadd.f32 %v285_v54, %v146_v51  ;;  %v1658_v58 = vpop.f32.mrb[5].mxu0  ;;  %v2135_v59 = vadd.f32 %v331_v55, %v147_v52  ;;  %v1664_v60 = vpop.f32.mrb[5].mxu1  ;;  %v2182_v51 = vld [vmem:[#allocation2 + $0x18] sm:$0xff]  ;;  %v2192_v55 = vld [vmem:[#allocation2 + $0x20] sm:$0xff] }
 0x131   :  { %v288_v62 = vpop.f32.mrb[6].mxu0  ;;  %v334_v63 = vpop.f32.mrb[6].mxu1  ;;  %v771_v60 = vld [vmem:[#allocation10] sm:$0xf] }
 0x132   :  { %v1659_v1 = vpop.f32.mrb[7].mxu0  ;;  %v536_v2 = vsel %vm529_vm3, %v2133_v57, -inf  ;;  %v1665_v3 = vpop.f32.mrb[7].mxu1  ;;  %v539_v5 = vsel %vm529_vm3, %v2135_v59, -inf  ;;  %v784_v63 = vsel %vm782_vm4, %v771_v60, 0 }
 0x133   :  { %537 = vmax.xlane.f32.xlu1 %v536_v2  ;;  %1691 = vmatpush3.bf16.msra.mxu0 %v784_v63 }
 0x134   :  { %1702 = vmatprep.subr.bf16.mxu0 %v1933_v0 }
 0x137   :  { %540 = vmax.xlane.f32.xlu1 %v539_v5  ;;  %v377_v9 = vpop.f32.mrb[8].mxu0  ;;  %v423_v10 = vpop.f32.mrb[8].mxu1  ;;  %v772_v5 = vld [vmem:[#allocation10 + $0x4] sm:$0xf] }
 0x138   :  { %v2141_v11 = vadd.f32 %v377_v9, %v148_v4  ;;  %v1670_v12 = vpop.f32.mrb[9].mxu0  ;;  %v2143_v13 = vadd.f32 %v423_v10, %v149_v6  ;;  %v1676_v14 = vpop.f32.mrb[9].mxu1  ;;  %v830_v6 = vsel %vm782_vm4, %v772_v5, 0 }
 0x139   :  { %v380_v17 = vpop.f32.mrb[10].mxu0  ;;  %v426_v18 = vpop.f32.mrb[10].mxu1  ;;  %1697 = vmatpush3.bf16.msra.mxu1 %v830_v6 }
 0x13a   :  { %v1671_v19 = vpop.f32.mrb[11].mxu0  ;;  %v542_v20 = vsel %vm529_vm3, %v2141_v11, -inf  ;;  %v1677_v21 = vpop.f32.mrb[11].mxu1  ;;  %v545_v22 = vsel %vm529_vm3, %v2143_v13, -inf  ;;  %1708 = vmatprep.subr.bf16.mxu1 %v1933_v0 }
 0x13b   :  { %543 = vmax.xlane.f32.xlu0 %v542_v20  ;;  %546 = vmax.xlane.f32.xlu1 %v545_v22 }
 0x13f   :  { %v469_v26 = vpop.f32.mrb[12].mxu0  ;;  %v515_v27 = vpop.f32.mrb[12].mxu1 }
 0x140   :  { %v2149_v28 = vadd.f32 %v469_v26, %v150_v24  ;;  %v1682_v29 = vpop.f32.mrb[13].mxu0  ;;  %v2151_v30 = vadd.f32 %v515_v27, %v151_v25  ;;  %v1688_v31 = vpop.f32.mrb[13].mxu1 }
 0x141   :  { %v472_v32 = vpop.f32.mrb[14].mxu0  ;;  %v518_v33 = vpop.f32.mrb[14].mxu1  ;;  %v773_v29 = vld [vmem:[#allocation10 + $0x8] sm:$0xf] }
 0x142   :  { %v1683_v34 = vpop.f32.mrb[15].mxu0  ;;  %v548_v35 = vsel %vm529_vm3, %v2149_v28, -inf  ;;  %v1689_v36 = vpop.f32.mrb[15].mxu1  ;;  %v551_v38 = vsel %vm529_vm3, %v2151_v30, -inf }
 0x143   :  { %549 = vmax.xlane.f32.xlu0 %v548_v35  ;;  %552 = vmax.xlane.f32.xlu1 %v551_v38  ;;  %v876_v35 = vsel %vm782_vm4, %v773_v29, 0  ;;  %v774_v36 = vld [vmem:[#allocation10 + $0xc] sm:$0xf] }
 0x1b8   :  { %v532_v41 = vpop.xlane.xlu0 %531 }
 0x1b9   :  { %v2160_v42 = vmax.f32 %v2157_v40, %v532_v41 }
 0x1bb   :  { %v562_v44 = vsub.f32 %v2157_v40, %v2160_v42  ;;  %1164 = vst.msk [vmem:[#allocation2] sm:$0xff] %vm78_vm2, %v2160_v42  ;;  %588 = vperm.xlu0 %1757, %v2160_v42  }
 0x1bc   :  { %v535_v45 = vpop.xlane.xlu0 %534 }
 0x1bd   :  { %v2170_v46 = vmax.f32 %v2162_v43, %v535_v45 }
 0x1bf   :  { %v563_v48 = vsub.f32 %v2162_v43, %v2170_v46  ;;  %1165 = vst.msk [vmem:[#allocation2 + $0x8] sm:$0xff] %vm78_vm2, %v2170_v46  ;;  %593 = vperm.xlu1 %1758, %v2170_v46  }
 0x1c0   :  { %v538_v49 = vpop.xlane.xlu1 %537 }
 0x1c1   :  { %v2180_v50 = vmax.f32 %v2172_v47, %v538_v49  ;;  %v922_v49 = vsel %vm782_vm4, %v774_v36, 0 }
 0x1c3   :  { %v564_v52 = vsub.f32 %v2172_v47, %v2180_v50  ;;  %1166 = vst.msk [vmem:[#allocation2 + $0x10] sm:$0xff] %vm78_vm2, %v2180_v50  ;;  %598 = vperm.xlu1 %1758, %v2180_v50  }
 0x1c4   :  { %v541_v53 = vpop.xlane.xlu1 %540 }
 0x1c5   :  { %v2190_v54 = vmax.f32 %v2182_v51, %v541_v53  ;;  %v775_v53 = vld [vmem:[#allocation10 + $0x10] sm:$0xf] }
 0x1c6   :  { %v968_v6 = vsel %vm782_vm4, %v775_v53, 0 }
 0x1c7   :  { %v565_v58 = vsub.f32 %v2182_v51, %v2190_v54  ;;  %1167 = vst.msk [vmem:[#allocation2 + $0x18] sm:$0xff] %vm78_vm2, %v2190_v54  ;;  %603 = vperm.xlu1 %1758, %v2190_v54  }
 0x1c8   :  { %v544_v61 = vpop.xlane.xlu0 %543  ;;  %v547_v62 = vpop.xlane.xlu1 %546 }
 0x1c9   :  { %v2203_v1 = vmax.f32 %v2192_v55, %v544_v61  ;;  %v2206_v2 = vmax.f32 %v2194_v56, %v547_v62 }
 0x1cb   :  { %v566_v3 = vsub.f32 %v2192_v55, %v2203_v1  ;;  %1168 = vst.msk [vmem:[#allocation2 + $0x20] sm:$0xff] %vm78_vm2, %v2203_v1  ;;  %608 = vperm.xlu1 %1758, %v2203_v1   ;;  %v567_v4 = vsub.f32 %v2194_v56, %v2206_v2  ;;  %1169 = vst.msk [vmem:[#allocation2 + $0x28] sm:$0xff] %vm78_vm2, %v2206_v2  ;;  %v650_v56 = vld [vmem:[#allocation3] sm:$0xff] }
 0x1cd   :  { %v578_v43 = vmul.f32 1.442695, %v566_v3  ;;  %v580_v40 = vmul.f32 1.442695, %v567_v4 }
 0x1cf   :  { %613 = vperm.xlu1 %1758, %v2206_v2   ;;  %v651_v2 = vld [vmem:[#allocation3 + $0x8] sm:$0xff] }
 0x1d0   :  { %v550_v9 = vpop.xlane.xlu0 %549  ;;  %v553_v10 = vpop.xlane.xlu1 %552 }
 0x1d1   :  { %v2226_v12 = vmax.f32 %v2219_v7, %v550_v9  ;;  %v2229_v14 = vmax.f32 %v2221_v8, %v553_v10  ;;  %v776_v9 = vld [vmem:[#allocation10 + $0x14] sm:$0xf] }
 0x1d3   :  { %v568_v15 = vsub.f32 %v2219_v7, %v2226_v12  ;;  %1170 = vst.msk [vmem:[#allocation2 + $0x30] sm:$0xff] %vm78_vm2, %v2226_v12  ;;  %618 = vperm.xlu1 %1758, %v2226_v12   ;;  %v569_v16 = vsub.f32 %v2221_v8, %v2229_v14  ;;  %1171 = vst.msk [vmem:[#allocation2 + $0x38] sm:$0xff] %vm78_vm2, %v2229_v14  ;;  %v652_v8 = vld [vmem:[#allocation3 + $0x10] sm:$0xff] }
 0x1d5   :  { %v582_v42 = vmul.f32 1.442695, %v568_v15 }
 0x1d7   :  { %623 = vperm.xlu1 %1758, %v2229_v14  }
 0x23a   :  { %v589_v17 = vpop.permute.xlu0 %588 }
 0x23b   :  { %v626_v18 = vsub.f32 %v2125_v37, %v589_v17 }
 0x23d   :  { %v634_v19 = vmul.f32 1.442695, %v626_v18 }
 0x23e   :  { %v594_v20 = vpop.permute.xlu1 %593 }
 0x23f   :  { %1759 = vpow2.f32 %v634_v19  ;;  %v627_v21 = vsub.f32 %v2127_v39, %v594_v20 }
 0x241   :  { %v636_v22 = vmul.f32 1.442695, %v627_v21  ;;  %v1014_v21 = vsel %vm782_vm4, %v776_v9, 0 }
 0x242   :  { %v599_v23 = vpop.permute.xlu1 %598 }
 0x243   :  { %1761 = vpow2.f32 %v636_v22  ;;  %v628_v24 = vsub.f32 %v2133_v57, %v599_v23  ;;  %v777_v22 = vld [vmem:[#allocation10 + $0x18] sm:$0xf] }
 0x245   :  { %v638_v25 = vmul.f32 1.442695, %v628_v24 }
 0x246   :  { %v604_v26 = vpop.permute.xlu1 %603 }
 0x247   :  { %1763 = vpow2.f32 %v638_v25  ;;  %v629_v27 = vsub.f32 %v2135_v59, %v604_v26 }
 0x249   :  { %v1760_v31 = vpop.eup %1759  ;;  %v640_v32 = vmul.f32 1.442695, %v629_v27  ;;  %v1060_v27 = vsel %vm782_vm4, %v777_v22, 0 }
 0x24a   :  { %v609_v33 = vpop.permute.xlu1 %608  ;;  %v666_v37 = vsel %vm529_vm3, %v1760_v31, 0.0  ;;  %v763_v34 = vpack.c.bf16 %v1760_v31, %v1760_v31 }
 0x24b   :  { %1765 = vpow2.f32 %v640_v32  ;;  %v630_v39 = vsub.f32 %v2141_v11, %v609_v33  ;;  %667 = vadd.xlane.f32.xlu1 %v666_v37 }
 0x24c   :  { %1693 = vmatmul.mubr.msk.bf16.vlgmr.msra.gmra.mrb[16].mxu0 %vm529_vm3, %v763_v34 }
 0x24d   :  { %v1762_v57 = vpop.eup %1761  ;;  %v642_v38 = vmul.f32 1.442695, %v630_v39  ;;  %1703 = vmatpush3.bf16.msra.mxu0 %v876_v35  ;;  %1704 = vmatprep.mubr.msk.bf16.mxu0 %vm1934_vm1, %v1933_v0 }
 0x24e   :  { %v614_v59 = vpop.permute.xlu1 %613  ;;  %v669_v41 = vsel %vm529_vm3, %v1762_v57, 0.0  ;;  %v764_v45 = vpack.c.bf16 %v1762_v57, %v1762_v57  ;;  %1714 = vmatprep.subr.bf16.mxu0 %v1933_v0 }
 0x24f   :  { %1767 = vpow2.f32 %v642_v38  ;;  %v631_v11 = vsub.f32 %v2143_v13, %v614_v59  ;;  %670 = vadd.xlane.f32.xlu0 %v669_v41  ;;  %v572_v38 = vmul.f32 1.442695, %v563_v48  ;;  %v574_v59 = vmul.f32 1.442695, %v564_v52 }
 0x250   :  { %1699 = vmatmul.mubr.msk.bf16.vlgmr.msra.gmra.mrb[16].mxu1 %vm529_vm3, %v764_v45  ;;  %v576_v41 = vmul.f32 1.442695, %v565_v58 }
 0x251   :  { %v1764_v60 = vpop.eup %1763  ;;  %v644_v61 = vmul.f32 1.442695, %v631_v11  ;;  %1709 = vmatpush3.bf16.msra.mxu1 %v922_v49  ;;  %1710 = vmatprep.mubr.msk.bf16.mxu1 %vm1934_vm1, %v1933_v0 }
 0x252   :  { %v619_v62 = vpop.permute.xlu1 %618  ;;  %v672_v63 = vsel %vm529_vm3, %v1764_v60, 0.0  ;;  %v765_v5 = vpack.c.bf16 %v1764_v60, %v1764_v60  ;;  %1720 = vmatprep.subr.bf16.mxu1 %v1933_v0  ;;  %v654_v60 = vld [vmem:[#allocation3 + $0x20] sm:$0xff] }
 0x253   :  { %1769 = vpow2.f32 %v644_v61  ;;  %v632_v13 = vsub.f32 %v2149_v28, %v619_v62  ;;  %673 = vadd.xlane.f32.xlu0 %v672_v63 }
 0x254   :  { %1705 = vmatmul.mubr.msk.bf16.vlgmr.msra.gmra.mrb[20].mxu0 %vm529_vm3, %v765_v5 }
 0x255   :  { %v1766_v10 = vpop.eup %1765  ;;  %v646_v17 = vmul.f32 1.442695, %v632_v13  ;;  %1715 = vmatpush3.bf16.msra.mxu0 %v968_v6  ;;  %1716 = vmatprep.mubr.msk.bf16.mxu0 %vm1934_vm1, %v1933_v0  ;;  %v655_v6 = vld [vmem:[#allocation3 + $0x28] sm:$0xff] }
 0x256   :  { %v624_v18 = vpop.permute.xlu1 %623  ;;  %v675_v19 = vsel %vm529_vm3, %v1766_v10, 0.0  ;;  %v766_v20 = vpack.c.bf16 %v1766_v10, %v1766_v10  ;;  %1726 = vmatprep.subr.bf16.mxu0 %v1933_v0 }
 0x257   :  { %1771 = vpow2.f32 %v646_v17  ;;  %v633_v28 = vsub.f32 %v2151_v30, %v624_v18  ;;  %676 = vadd.xlane.f32.xlu1 %v675_v19  ;;  %v778_v30 = vld [vmem:[#allocation10 + $0x1c] sm:$0xf]  ;;  %v656_v18 = vld [vmem:[#allocation3 + $0x30] sm:$0xff] }
 0x258   :  { %1711 = vmatmul.mubr.msk.bf16.vlgmr.msra.gmra.mrb[20].mxu1 %vm529_vm3, %v766_v20  ;;  %v1106_v33 = vsel %vm782_vm4, %v778_v30, 0 }
 0x259   :  { %v1768_v23 = vpop.eup %1767  ;;  %v648_v24 = vmul.f32 1.442695, %v633_v28  ;;  %1721 = vmatpush3.bf16.msra.mxu1 %v1014_v21  ;;  %1722 = vmatprep.mubr.msk.bf16.mxu1 %vm1934_vm1, %v1933_v0 }
 0x25a   :  { %v678_v25 = vsel %vm529_vm3, %v1768_v23, 0.0  ;;  %v767_v26 = vpack.c.bf16 %v1768_v23, %v1768_v23  ;;  %1732 = vmatprep.subr.bf16.mxu1 %v1933_v0  ;;  %v657_v23 = vld [vmem:[#allocation3 + $0x38] sm:$0xff] }
 0x25b   :  { %1773 = vpow2.f32 %v648_v24  ;;  %679 = vadd.xlane.f32.xlu0 %v678_v25 }
 0x25c   :  { %1717 = vmatmul.mubr.msk.bf16.vlgmr.msra.gmra.mrb[24].mxu0 %vm529_vm3, %v767_v26  ;;  %1775 = vpow2.f32 %v572_v38  ;;  %v707_v38 = vld [vmem:[#allocation4] sm:$0xff] }
 0x25d   :  { %v1770_v29 = vpop.eup %1769  ;;  %1727 = vmatpush3.bf16.msra.mxu0 %v1060_v27  ;;  %1728 = vmatprep.mubr.msk.bf16.mxu0 %vm1934_vm1, %v1933_v0 }
 0x25e   :  { %v681_v31 = vsel %vm529_vm3, %v1770_v29, 0.0  ;;  %v768_v32 = vpack.c.bf16 %v1770_v29, %v1770_v29 }
 0x25f   :  { %682 = vadd.xlane.f32.xlu1 %v681_v31 }
 0x260   :  { %1723 = vmatmul.mubr.msk.bf16.vlgmr.msra.gmra.mrb[24].mxu1 %vm529_vm3, %v768_v32 }
 0x261   :  { %v1772_v37 = vpop.eup %1771  ;;  %1733 = vmatpush3.bf16.msra.mxu1 %v1106_v33  ;;  %1734 = vmatprep.mubr.msk.bf16.mxu1 %vm1934_vm1, %v1933_v0  ;;  %v570_v0 = vmul.f32 1.442695, %v562_v44  ;;  %v584_v44 = vmul.f32 1.442695, %v569_v16  ;;  %v653_v16 = vld [vmem:[#allocation3 + $0x18] sm:$0xff] }
 0x262   :  { %v684_v34 = vsel %vm529_vm3, %v1772_v37, 0.0  ;;  %v769_v35 = vpack.c.bf16 %v1772_v37, %v1772_v37 }
 0x263   :  { %685 = vadd.xlane.f32.xlu0 %v684_v34  ;;  %1777 = vpow2.f32 %v570_v0 }
 0x264   :  { %1729 = vmatmul.mubr.msk.bf16.vlgmr.msra.gmra.mrb[28].mxu0 %vm529_vm3, %v769_v35  ;;  %1779 = vpow2.f32 %v574_v59 }
 0x265   :  { %v1774_v39 = vpop.eup %1773  ;;  %1781 = vpow2.f32 %v576_v41 }
 0x266   :  { %v687_v36 = vsel %vm529_vm3, %v1774_v39, 0.0  ;;  %v770_v57 = vpack.c.bf16 %v1774_v39, %v1774_v39  ;;  %1783 = vpow2.f32 %v578_v43  ;;  %v1776_v46 = vpop.eup %1775  ;;  %v708_v43 = vld [vmem:[#allocation4 + $0x8] sm:$0xff] }
 0x267   :  { %688 = vadd.xlane.f32.xlu1 %v687_v36  ;;  %1785 = vpow2.f32 %v580_v40  ;;  %v659_v4 = vmul.f32 %v1776_v46, %v651_v2  ;;  %v710_v2 = vld [vmem:[#allocation4 + $0x18] sm:$0xff] }
 0x268   :  { %1735 = vmatmul.mubr.msk.bf16.vlgmr.msra.gmra.mrb[28].mxu1 %vm529_vm3, %v770_v57  ;;  %1787 = vpow2.f32 %v582_v42 }
 0x269   :  { %1789 = vpow2.f32 %v584_v44 }
 0x26d   :  { %v1778_v47 = vpop.eup %1777 }
 0x26e   :  { %v1780_v48 = vpop.eup %1779  ;;  %v658_v58 = vmul.f32 %v1778_v47, %v650_v56 }
 0x26f   :  { %v1782_v50 = vpop.eup %1781  ;;  %v660_v14 = vmul.f32 %v1780_v48, %v652_v8 }
 0x270   :  { %v1784_v51 = vpop.eup %1783  ;;  %v661_v11 = vmul.f32 %v1782_v50, %v653_v16  ;;  %v711_v16 = vld [vmem:[#allocation4 + $0x20] sm:$0xff] }
 0x271   :  { %v1786_v52 = vpop.eup %1785  ;;  %v662_v63 = vmul.f32 %v1784_v51, %v654_v60 }
 0x272   :  { %v1788_v54 = vpop.eup %1787  ;;  %v663_v10 = vmul.f32 %v1786_v52, %v655_v6 }
 0x273   :  { %v1790_v55 = vpop.eup %1789  ;;  %v664_v28 = vmul.f32 %v1788_v54, %v656_v18 }
 0x274   :  { %v665_v27 = vmul.f32 %v1790_v55, %v657_v23 }
 0x278   :  { %722 = vperm.xlu1 %1758, %v1776_v46  }
 0x279   :  { %717 = vperm.xlu0 %1757, %v1778_v47  }
 0x27c   :  { %727 = vperm.xlu1 %1758, %v1780_v48  }
 0x27d   :  { %732 = vperm.xlu0 %1757, %v1782_v50   ;;  %v709_v50 = vld [vmem:[#allocation4 + $0x10] sm:$0xff] }
 0x280   :  { %737 = vperm.xlu1 %1758, %v1784_v51  }
 0x281   :  { %742 = vperm.xlu0 %1757, %v1786_v52  }
 0x284   :  { %747 = vperm.xlu1 %1758, %v1788_v54  }
 0x285   :  { %752 = vperm.xlu0 %1757, %v1790_v55  }
 0x2d8   :  { %v668_v1 = vpop.xlane.xlu1 %667 }
 0x2d9   :  { %v690_v3 = vadd.f32 %v668_v1, %v658_v58 }
 0x2db   :  { %699 = vst.msk [vmem:[#allocation3] sm:$0xff] %vm78_vm2, %v690_v3 }
 0x2dc   :  { %v671_v7 = vpop.xlane.xlu0 %670 }
 0x2dd   :  { %v691_v12 = vadd.f32 %v671_v7, %v659_v4 }
 0x2df   :  { %700 = vst.msk [vmem:[#allocation3 + $0x8] sm:$0xff] %vm78_vm2, %v691_v12 }
 0x2e0   :  { %v674_v15 = vpop.xlane.xlu0 %673 }
 0x2e1   :  { %v692_v45 = vadd.f32 %v674_v15, %v660_v14 }
 0x2e2   :  { %v1175_v49 = vld [vmem:[#allocation3] sm:$0xff] }
 0x2e3   :  { %701 = vst.msk [vmem:[#allocation3 + $0x10] sm:$0xff] %vm78_vm2, %v692_v45  ;;  %1791 = vrcp.f32 %v1175_v49 }
 0x2e4   :  { %v677_v53 = vpop.xlane.xlu1 %676 }
 0x2e5   :  { %v693_v61 = vadd.f32 %v677_v53, %v661_v11 }
 0x2e6   :  { %v1176_v62 = vld [vmem:[#allocation3 + $0x8] sm:$0xff] }
 0x2e7   :  { %702 = vst.msk [vmem:[#allocation3 + $0x18] sm:$0xff] %vm78_vm2, %v693_v61  ;;  %1793 = vrcp.f32 %v1176_v62 }
 0x2e8   :  { %v680_v5 = vpop.xlane.xlu0 %679 }
 0x2e9   :  { %v694_v13 = vadd.f32 %v680_v5, %v662_v63  ;;  %v712_v63 = vld [vmem:[#allocation4 + $0x28] sm:$0xff] }
 0x2ea   :  { %v1177_v9 = vld [vmem:[#allocation3 + $0x10] sm:$0xff] }
 0x2eb   :  { %703 = vst.msk [vmem:[#allocation3 + $0x20] sm:$0xff] %vm78_vm2, %v694_v13  ;;  %1795 = vrcp.f32 %v1177_v9 }
 0x2ec   :  { %v683_v17 = vpop.xlane.xlu1 %682 }
 0x2ed   :  { %v1792_v19 = vpop.eup %1791  ;;  %v695_v20 = vadd.f32 %v683_v17, %v663_v10 }
 0x2ee   :  { %1201 = vperm.xlu1 %1758, %v1792_v19   ;;  %v1178_v21 = vld [vmem:[#allocation3 + $0x18] sm:$0xff]  ;;  %v713_v19 = vld [vmem:[#allocation4 + $0x30] sm:$0xff] }
 0x2ef   :  { %704 = vst.msk [vmem:[#allocation3 + $0x28] sm:$0xff] %vm78_vm2, %v695_v20  ;;  %1797 = vrcp.f32 %v1178_v21 }
 0x2f0   :  { %v686_v22 = vpop.xlane.xlu0 %685 }
 0x2f1   :  { %v1794_v24 = vpop.eup %1793  ;;  %v696_v25 = vadd.f32 %v686_v22, %v664_v28 }
 0x2f2   :  { %1206 = vperm.xlu0 %1757, %v1794_v24   ;;  %v1179_v26 = vld [vmem:[#allocation3 + $0x20] sm:$0xff] }
 0x2f3   :  { %705 = vst.msk [vmem:[#allocation3 + $0x30] sm:$0xff] %vm78_vm2, %v696_v25  ;;  %1799 = vrcp.f32 %v1179_v26  ;;  %v714_v26 = vld [vmem:[#allocation4 + $0x38] sm:$0xff] }
 0x2f4   :  { %v689_v30 = vpop.xlane.xlu1 %688 }
 0x2f5   :  { %v1796_v29 = vpop.eup %1795  ;;  %v697_v31 = vadd.f32 %v689_v30, %v665_v27 }
 0x2f6   :  { %1211 = vperm.xlu1 %1758, %v1796_v29   ;;  %v1180_v32 = vld [vmem:[#allocation3 + $0x28] sm:$0xff] }
 0x2f7   :  { %706 = vst.msk [vmem:[#allocation3 + $0x38] sm:$0xff] %vm78_vm2, %v697_v31  ;;  %1801 = vrcp.f32 %v1180_v32 }
 0x2f8   :  { %v718_v0 = vpop.permute.xlu0 %717  ;;  %v723_v59 = vpop.permute.xlu1 %722 }
 0x2f9   :  { %v1798_v33 = vpop.eup %1797  ;;  %v755_v41 = vmul.f32 %v718_v0, %v707_v38  ;;  %v756_v47 = vmul.f32 %v723_v59, %v708_v43  ;;  %v1937_v0 = vmov 1983009808  }
 0x2fa   :  { %1216 = vperm.xlu0 %1757, %v1798_v33   ;;  %v1181_v37 = vld [vmem:[#allocation3 + $0x30] sm:$0xff]  ;;  %v1250_v59 = vunpack.c.l.s4 %v1937_v0 }
 0x2fb   :  { %1803 = vrcp.f32 %v1181_v37 }
 0x2fc   :  { %v728_v51 = vpop.permute.xlu1 %727  ;;  %v733_v3 = vpop.permute.xlu0 %732 }
 0x2fd   :  { %v1800_v34 = vpop.eup %1799  ;;  %v757_v58 = vmul.f32 %v728_v51, %v709_v50  ;;  %v758_v14 = vmul.f32 %v733_v3, %v710_v2 }
 0x2fe   :  { %1221 = vperm.xlu1 %1758, %v1800_v34   ;;  %v1182_v35 = vld [vmem:[#allocation3 + $0x38] sm:$0xff] }
 0x2ff   :  { %1805 = vrcp.f32 %v1182_v35 }
 0x300   :  { %v738_v45 = vpop.permute.xlu1 %737  ;;  %v743_v5 = vpop.permute.xlu0 %742 }
 0x301   :  { %v1802_v39 = vpop.eup %1801  ;;  %v759_v61 = vmul.f32 %v738_v45, %v711_v16  ;;  %v760_v17 = vmul.f32 %v743_v5, %v712_v63 }
 0x302   :  { %1226 = vperm.xlu0 %1757, %v1802_v39  }
 0x304   :  { %v748_v20 = vpop.permute.xlu1 %747  ;;  %v753_v27 = vpop.permute.xlu0 %752 }
 0x305   :  { %v1804_v36 = vpop.eup %1803  ;;  %v761_v24 = vmul.f32 %v748_v20, %v713_v19  ;;  %v762_v33 = vmul.f32 %v753_v27, %v714_v26 }
 0x306   :  { %1231 = vperm.xlu1 %1758, %v1804_v36  }
 0x309   :  { %v1806_v57 = vpop.eup %1805 }
 0x30a   :  { %1236 = vperm.xlu0 %1757, %v1806_v57  }
 0x31f   :  { %v820_v40 = vpop.f32.mrb[16].mxu0 }
 0x320   :  { %v1148_v42 = vadd.f32 %v820_v40, %v755_v41  ;;  %v1694_v44 = vpop.f32.mrb[17].mxu0  ;;  %v1252_v41 = vlaneseq }
 0x321   :  { %v823_v46 = vpop.f32.mrb[18].mxu0 }
 0x322   :  { %1156 = vst.msk [vmem:[#allocation4] sm:$0xff] %vm95_vm0, %v1148_v42  ;;  %v1695_v48 = vpop.f32.mrb[19].mxu0  ;;  %v1251_v42 = vunpack.c.0.s8 %v1250_v59  ;;  %v1253_v44 = vshrl.u32 %v1252_v41, 7 }
 0x323   :  { %v866_v52 = vpop.f32.mrb[16].mxu1 }
 0x324   :  { %v1149_v54 = vadd.f32 %v866_v52, %v756_v47  ;;  %v1700_v55 = vpop.f32.mrb[17].mxu1  ;;  %v1938_v47 = vmov 1934713408  }
 0x325   :  { %v869_v56 = vpop.f32.mrb[18].mxu1  ;;  %v1314_v48 = vunpack.c.l.s4 %v1938_v47  ;;  %v2327_v55 = vsub.s32 %v1251_v42, %v1253_v44 }
 0x326   :  { %1157 = vst.msk [vmem:[#allocation4 + $0x8] sm:$0xff] %vm95_vm0, %v1149_v54  ;;  %v1701_v1 = vpop.f32.mrb[19].mxu1 }
 0x327   :  { %v912_v4 = vpop.f32.mrb[20].mxu0 }
 0x328   :  { %v1150_v7 = vadd.f32 %v912_v4, %v757_v58  ;;  %v1706_v8 = vpop.f32.mrb[21].mxu0  ;;  %v1315_v58 = vunpack.c.0.s8 %v1314_v48 }
 0x329   :  { %v915_v12 = vpop.f32.mrb[22].mxu0  ;;  %v1191_v51 = vld [vmem:[#allocation4] sm:$0xff] }
 0x32a   :  { %1158 = vst.msk [vmem:[#allocation4 + $0x10] sm:$0xff] %vm95_vm0, %v1150_v7  ;;  %v1707_v15 = vpop.f32.mrb[23].mxu0 }
 0x32b   :  { %v958_v49 = vpop.f32.mrb[20].mxu1 }
 0x32c   :  { %v1151_v11 = vadd.f32 %v958_v49, %v758_v14  ;;  %v1712_v53 = vpop.f32.mrb[21].mxu1  ;;  %v2329_v14 = vsub.s32 %v1315_v58, %v1253_v44 }
 0x32d   :  { %v961_v60 = vpop.f32.mrb[22].mxu1  ;;  %v1192_v54 = vld [vmem:[#allocation4 + $0x8] sm:$0xff] }
 0x32e   :  { %1159 = vst.msk [vmem:[#allocation4 + $0x18] sm:$0xff] %vm95_vm0, %v1151_v11  ;;  %v1713_v62 = vpop.f32.mrb[23].mxu1 }
 0x32f   :  { %v1004_v6 = vpop.f32.mrb[24].mxu0 }
 0x330   :  { %v1152_v13 = vadd.f32 %v1004_v6, %v759_v61  ;;  %v1718_v9 = vpop.f32.mrb[25].mxu0 }
 0x331   :  { %v1007_v10 = vpop.f32.mrb[26].mxu0  ;;  %v1193_v40 = vld [vmem:[#allocation4 + $0x10] sm:$0xff] }
 0x332   :  { %1160 = vst.msk [vmem:[#allocation4 + $0x20] sm:$0xff] %vm95_vm0, %v1152_v13  ;;  %v1719_v18 = vpop.f32.mrb[27].mxu0 }
 0x333   :  { %v1050_v21 = vpop.f32.mrb[24].mxu1 }
 0x334   :  { %v1153_v28 = vadd.f32 %v1050_v21, %v760_v17  ;;  %v1724_v22 = vpop.f32.mrb[25].mxu1 }
 0x335   :  { %v1053_v23 = vpop.f32.mrb[26].mxu1  ;;  %v1194_v56 = vld [vmem:[#allocation4 + $0x18] sm:$0xff] }
 0x336   :  { %1161 = vst.msk [vmem:[#allocation4 + $0x28] sm:$0xff] %vm95_vm0, %v1153_v28  ;;  %v1725_v25 = vpop.f32.mrb[27].mxu1 }
 0x337   :  { %v1096_v30 = vpop.f32.mrb[28].mxu0 }
 0x338   :  { %v1154_v29 = vadd.f32 %v1096_v30, %v761_v24  ;;  %v1730_v31 = vpop.f32.mrb[29].mxu0 }
 0x339   :  { %v1099_v32 = vpop.f32.mrb[30].mxu0  ;;  %v1195_v25 = vld [vmem:[#allocation4 + $0x20] sm:$0xff] }
 0x33a   :  { %1162 = vst.msk [vmem:[#allocation4 + $0x30] sm:$0xff] %vm95_vm0, %v1154_v29  ;;  %v1731_v37 = vpop.f32.mrb[31].mxu0 }
 0x33b   :  { %v1142_v34 = vpop.f32.mrb[28].mxu1 }
 0x33c   :  { %v1155_v35 = vadd.f32 %v1142_v34, %v762_v33  ;;  %v1736_v39 = vpop.f32.mrb[29].mxu1 }
 0x33d   :  { %v1145_v36 = vpop.f32.mrb[30].mxu1  ;;  %v1196_v30 = vld [vmem:[#allocation4 + $0x28] sm:$0xff] }
 0x33e   :  { %1163 = vst.msk [vmem:[#allocation4 + $0x38] sm:$0xff] %vm95_vm0, %v1155_v35  ;;  %v1737_v57 = vpop.f32.mrb[31].mxu1 }
 0x341   :  { %v1197_v20 = vld [vmem:[#allocation4 + $0x30] sm:$0xff] }
 0x345   :  { %v1198_v32 = vld [vmem:[#allocation4 + $0x38] sm:$0xff] }
 0x36d   :  { %v1202_v38 = vpop.permute.xlu1 %1201 }
 0x36e   :  { %v1239_v52 = vmul.f32 %v1202_v38, %v1191_v51 }
 0x371   :  { %v1207_v43 = vpop.permute.xlu0 %1206 }
 0x372   :  { %v1240_v2 = vmul.f32 %v1207_v43, %v1192_v54 }
 0x375   :  { %v1212_v46 = vpop.permute.xlu1 %1211 }
 0x376   :  { %v1241_v50 = vmul.f32 %v1212_v46, %v1193_v40 }
 0x378   :  { %v1247_v3 = vcombine.low %v1239_v52, %v1241_v50  ;;  %v1248_v4 = vcombine.high %v1239_v52, %v1241_v50 }
 0x379   :  { %v1217_v1 = vpop.permute.xlu0 %1216 }
 0x37a   :  { %v1242_v7 = vmul.f32 %v1217_v1, %v1194_v56  ;;  %v1255_v15 = vrot.slane %v1247_v3, %v2327_v55  ;;  %v1262_v16 = vrot.slane %v1248_v4, %v2327_v55 }
 0x37c   :  { %v1263_v8 = vcombine.low %v1240_v2, %v1242_v7  ;;  %v1264_v12 = vcombine.high %v1240_v2, %v1242_v7 }
 0x37d   :  { %v1222_v62 = vpop.permute.xlu1 %1221 }
 0x37e   :  { %v1271_v45 = vrot.slane %v1263_v8, %v2327_v55  ;;  %v1278_v49 = vrot.slane %v1264_v12, %v2327_v55  ;;  %v1243_v27 = vmul.f32 %v1222_v62, %v1195_v25 }
 0x380   :  { %v1311_v11 = vcombine.low %v1255_v15, %v1271_v45  ;;  %v1312_v53 = vcombine.high %v1255_v15, %v1271_v45  ;;  %v1327_v60 = vcombine.low %v1262_v16, %v1278_v49  ;;  %v1328_v61 = vcombine.high %v1262_v16, %v1278_v49 }
 0x381   :  { %v1227_v19 = vpop.permute.xlu0 %1226 }
 0x382   :  { %v1319_v63 = vrot.slane %v1311_v11, %v2329_v14  ;;  %v1326_v5 = vrot.slane %v1312_v53, %v2329_v14  ;;  %v1335_v6 = vrot.slane %v1327_v60, %v2329_v14  ;;  %v1342_v13 = vrot.slane %v1328_v61, %v2329_v14 }
 0x383   :  { %v1244_v31 = vmul.f32 %v1227_v19, %v1196_v30 }
 0x384   :  { %v1586_v9 = vcombine.low %v1319_v63, %v1326_v5  ;;  %v1588_v10 = vcombine.high %v1319_v63, %v1326_v5  ;;  %v1590_v17 = vcombine.low %v1335_v6, %v1342_v13  ;;  %v1592_v18 = vcombine.high %v1335_v6, %v1342_v13 }
 0x385   :  { %v1232_v21 = vpop.permute.xlu1 %1231 }
 0x386   :  { %v1245_v28 = vmul.f32 %v1232_v21, %v1197_v20  ;;  %v1391_v22 = vrot.slane %v1586_v9, %v2327_v55  ;;  %v1407_v23 = vrot.slane %v1588_v10, %v2327_v55  ;;  %v1423_v24 = vrot.slane %v1590_v17, %v2327_v55 }
 0x387   :  { %v1439_v26 = vrot.slane %v1592_v18, %v2327_v55 }
 0x388   :  { %v1447_v29 = vcombine.low %v1391_v22, %v1407_v23  ;;  %v1448_v34 = vcombine.high %v1391_v22, %v1407_v23  ;;  %v1279_v39 = vcombine.low %v1243_v27, %v1245_v28  ;;  %v1280_v36 = vcombine.high %v1243_v27, %v1245_v28 }
 0x389   :  { %v1237_v33 = vpop.permute.xlu0 %1236  ;;  %v1479_v37 = vcombine.low %v1423_v24, %v1439_v26  ;;  %v1480_v35 = vcombine.high %v1423_v24, %v1439_v26 }
 0x38a   :  { %v1246_v57 = vmul.f32 %v1237_v33, %v1198_v32  ;;  %v1455_v38 = vrot.slane %v1447_v29, %v2329_v14  ;;  %v1462_v42 = vrot.slane %v1448_v34, %v2329_v14  ;;  %v1287_v46 = vrot.slane %v1279_v39, %v2327_v55 }
 0x38b   :  { %v1487_v0 = vrot.slane %v1479_v37, %v2329_v14  ;;  %v1494_v44 = vrot.slane %v1480_v35, %v2329_v14  ;;  %v1294_v47 = vrot.slane %v1280_v36, %v2327_v55 }
 0x38c   :  { %v1295_v59 = vcombine.low %v1244_v31, %v1246_v57  ;;  %v1296_v41 = vcombine.high %v1244_v31, %v1246_v57 }
 0x38d   :  { %v1512_v43 = vcombine.high %v1455_v38, %v1487_v0  ;;  %v1511_v40 = vcombine.low %v1455_v38, %v1487_v0  ;;  %v1513_v58 = vcombine.low %v1462_v42, %v1494_v44  ;;  %v1514_v16 = vcombine.high %v1462_v42, %v1494_v44 }
 0x38e   :  { %v1303_v48 = vrot.slane %v1295_v59, %v2327_v55  ;;  %v1310_v50 = vrot.slane %v1296_v41, %v2327_v55 }
 0x38f   :  { %1520 = vrot.lane.b32.xlu1 %v1512_v43, %s1931_s2 }
 0x390   :  { %v1343_v51 = vcombine.low %v1287_v46, %v1303_v48  ;;  %v1344_v52 = vcombine.high %v1287_v46, %v1303_v48  ;;  %v1359_v54 = vcombine.low %v1294_v47, %v1310_v50  ;;  %v1360_v56 = vcombine.high %v1294_v47, %v1310_v50 }
 0x392   :  { %v1351_v1 = vrot.slane %v1343_v51, %v2329_v14  ;;  %v1358_v2 = vrot.slane %v1344_v52, %v2329_v14  ;;  %v1367_v3 = vrot.slane %v1359_v54, %v2329_v14  ;;  %v1374_v4 = vrot.slane %v1360_v56, %v2329_v14 }
 0x393   :  { %1524 = vrot.lane.b32.xlu1 %v1513_v58, %s1927_s27 }
 0x394   :  { %v1587_v7 = vcombine.low %v1351_v1, %v1358_v2  ;;  %v1589_v8 = vcombine.high %v1351_v1, %v1358_v2  ;;  %v1591_v12 = vcombine.low %v1367_v3, %v1374_v4  ;;  %v1593_v15 = vcombine.high %v1367_v3, %v1374_v4 }
 0x396   :  { %v1398_v45 = vrot.slane %v1587_v7, %v2327_v55  ;;  %v1414_v49 = vrot.slane %v1589_v8, %v2327_v55  ;;  %v1430_v11 = vrot.slane %v1591_v12, %v2327_v55  ;;  %v1446_v53 = vrot.slane %v1593_v15, %v2327_v55 }
 0x397   :  { %1528 = vrot.lane.b32.xlu1 %v1514_v16, %s1939_s3 }
 0x398   :  { %v1463_v60 = vcombine.low %v1398_v45, %v1414_v49  ;;  %v1495_v61 = vcombine.low %v1430_v11, %v1446_v53  ;;  %v1464_v62 = vcombine.high %v1398_v45, %v1414_v49  ;;  %v1496_v63 = vcombine.high %v1430_v11, %v1446_v53 }
 0x39a   :  { %v1471_v5 = vrot.slane %v1463_v60, %v2329_v14  ;;  %v1503_v6 = vrot.slane %v1495_v61, %v2329_v14  ;;  %v1478_v10 = vrot.slane %v1464_v62, %v2329_v14  ;;  %v1510_v17 = vrot.slane %v1496_v63, %v2329_v14 }
 0x39c   :  { %v1516_v13 = vcombine.high %v1471_v5, %v1503_v6  ;;  %v1515_v9 = vcombine.low %v1471_v5, %v1503_v6  ;;  %v1517_v18 = vcombine.low %v1478_v10, %v1510_v17  ;;  %v1518_v55 = vcombine.high %v1478_v10, %v1510_v17 }
 0x39e   :  { %1532 = vrot.lane.b32.xlu0 %v1516_v13, %s1931_s2 }
 0x3a2   :  { %1536 = vrot.lane.b32.xlu0 %v1517_v18, %s1927_s27  ;;  %s1895_s27 = scalar_lea.vmem %s1560_s13, 256 }
 0x3a3   :  { %p1896_p4 = scmp.ne.s32.totalorder %s1560_s13, %s1895_s27  ;;  %p1901_p6 = scmp.lt.s32.totalorder %s1895_s27, %s1895_s27 }
 0x3a5   :  { %p1902_p7 = por %p1901_p6, %p1900_p5 }
 0x3a6   :  { %1540 = vrot.lane.b32.xlu0 %v1518_v55, %s1939_s3 }
 0x3a7   :  { %p1903_p8 = pnand %p1902_p7, %p1896_p4 }
 0x401   :  { %v1521_v19 = vpop.permute.xlu1 %1520 }
 0x402   :  { %v1543_v21 = vsel %vm95_vm0, %v1511_v40, %v1521_v19 }
 0x405   :  { %v1525_v20 = vpop.permute.xlu1 %1524 }
 0x406   :  { %v1545_v28 = vsel %vm1544_vm5, %v1543_v21, %v1525_v20 }
 0x409   :  { %v1529_v22 = vpop.permute.xlu1 %1528 }
 0x40a   :  { %v1547_v23 = vsel %vm1546_vm6, %v1545_v28, %v1529_v22 }
 0x40b   :  { %1551 = vst [vmem:[#allocation13] sm:$0xff] %v1547_v23 }
 0x410   :  { %v1533_v24 = vpop.permute.xlu0 %1532 }
 0x411   :  { %v1548_v14 = vsel %vm95_vm0, %v1515_v9, %v1533_v24 }
 0x414   :  { %v1537_v25 = vpop.permute.xlu0 %1536 }
 0x415   :  { %v1549_v26 = vsel %vm1544_vm5, %v1548_v14, %v1537_v25 }
 0x418   :  { %v1541_v27 = vpop.permute.xlu0 %1540 }
 0x419   :  { %v1550_v30 = vsel %vm1546_vm6, %v1549_v26, %v1541_v27 }
 0x41a   :  { %1552 = vst [vmem:[#allocation13 + $0x8] sm:$0xff] %v1550_v30 }
 0x41b   :  { %1906 = shalt.err (!%p1903_p8)
}
 0x41c   :  { %s1907_s16 = scalar_lea.hbm %s2385_s4, 256 }
 0x41d   :  { %p1908_p9 = scmp.ne.s32.totalorder %s2385_s4, %s1907_s16  ;;  %p1911_p10 = scmp.lt.u32.totalorder %s1907_s16, %s2385_s4 }
 0x41f   :  { %p1913_p11 = pnand %p1911_p10, %p1908_p9 }
 0x421   :  { %1916 = shalt.err (!%p1913_p11)
}
 0x422   :  { %1562 = dma.vmem_to_hbm [thread:$0]  %s1560_s13, 256, %s2385_s4, [#allocation7]  }
 0x423   :  { %1923 = dma.done.wait [#allocation7], 256  }
 0x424   :  { %1924 = vsyncadd [#allocation7], 4294967040 }
 0x425   :  { %1566 = vsyncpa [#allocation6], 1 }
 0x426   :  { %1567 = vsyncpa [#allocation9], 1 }
 0x427   :  { %1568 = vsyncpa [#allocation12], 1 }
 0x428   :  { %1569 = vsyncpa [#allocation7], 1 }

</bundles_post_ra>
